<compile_context>
chip_gen: v7x
topology: tpu7x:2x2x1
jax: 0.10.0
libtpu: 0.0.40
codegen_flags: <defaults>
</compile_context>

<pallas_src>
import jax
import jax.numpy as jnp
from jax.experimental import pallas as pl
from jax.experimental.pallas import tpu as pltpu

HIDDEN = 64
TILE_B = 1024  # lanes per grid step; multiple of 128 (sweepable: 256..4096)


def mlp_kernel(x_ref, w1_ref, b1_ref, w2_ref, b2_ref, w3_ref, b3_ref, o_ref):
    # x tile: (1, T)   activations: (HIDDEN, T)   output tile: (1, T)

    # Hoist all loads once per tile (broadcasts are not CSE'd by JAX).
    x = x_ref[...]        # (1, T)
    w1 = w1_ref[...]      # (64, 1)
    b1 = b1_ref[...]      # (64, 1)
    w2 = w2_ref[...]      # (64, 64)
    b2 = b2_ref[...]      # (64, 1)
    w3 = w3_ref[...]      # (1, 64)
    b3 = b3_ref[...]      # (1, 1)

    # ---- Linear(1 -> 64) + ReLU ----
    # in_features == 1: pure VPU broadcast FMA, (64,1)*(1,T)+(64,1) -> (64,T).
    h1 = jnp.maximum(w1 * x + b1, 0.0)

    # ---- Dropout(0.2) ----
    # TODO(synk): identity (eval mode); training-mode RNG masking not implemented.

    # ---- Linear(64 -> 64) + ReLU ----  (64,64) @ (64,T) -> (64,T), lane-dense MXU
    h2 = jnp.dot(w2, h1, preferred_element_type=jnp.float32) + b2
    h2 = jnp.maximum(h2, 0.0)

    # ---- Linear(64 -> 1) ----  (1,64) @ (64,T) -> (1,T), N = T keeps lanes dense
    out = jnp.dot(w3, h2, preferred_element_type=jnp.float32) + b3
    o_ref[...] = out.astype(o_ref.dtype)


def predictor_forward(x, params, tile_b=TILE_B):
    """x: (B, 1) float32. params in PyTorch (out_features, in_features) layout."""
    B = x.shape[0]
    w1, b1, w2, b2, w3, b3 = (params[k] for k in ("w1", "b1", "w2", "b2", "w3", "b3"))

    # Batch goes to the lane axis; pad to a multiple of the tile size.
    n_tiles = pl.cdiv(B, tile_b)
    Bp = n_tiles * tile_b
    xt = x.reshape(1, B)
    if Bp != B:
        xt = jnp.pad(xt, ((0, 0), (0, Bp - B)))

    const = lambda i: (0, 0)  # weights/biases: same block every step (VMEM-resident)

    out_t = pl.pallas_call(
        mlp_kernel,
        out_shape=jax.ShapeDtypeStruct((1, Bp), jnp.float32),
        grid=(n_tiles,),
        in_specs=[
            pl.BlockSpec((1, tile_b), lambda i: (0, i)),       # x (lane-dense tile)
            pl.BlockSpec((HIDDEN, 1), const),                  # w1
            pl.BlockSpec((HIDDEN, 1), const),                  # b1
            pl.BlockSpec((HIDDEN, HIDDEN), const),             # w2
            pl.BlockSpec((HIDDEN, 1), const),                  # b2
            pl.BlockSpec((1, HIDDEN), const),                  # w3
            pl.BlockSpec((1, 1), const),                       # b3
        ],
        out_specs=pl.BlockSpec((1, tile_b), lambda i: (0, i)),
        compiler_params=pltpu.CompilerParams(
            dimension_semantics=("parallel",),
        ),
    )(xt, w1, b1, w2, b2, w3, b3)

    return out_t[0, :B].reshape(B, 1)


def init_params(key):
    """Deterministic synthetic parameters in PyTorch (out, in) layout."""
    ks = jax.random.split(key, 6)
    scale = 0.1
    return {
        "w1": scale * jax.random.normal(ks[0], (HIDDEN, 1), jnp.float32),
        "b1": scale * jax.random.normal(ks[1], (HIDDEN, 1), jnp.float32),
        "w2": scale * jax.random.normal(ks[2], (HIDDEN, HIDDEN), jnp.float32),
        "b2": scale * jax.random.normal(ks[3], (HIDDEN, 1), jnp.float32),
        "w3": scale * jax.random.normal(ks[4], (1, HIDDEN), jnp.float32),
        "b3": scale * jax.random.normal(ks[5], (1, 1), jnp.float32),
    }


def reference_forward(x, p):
    """Pure-JAX reference mirroring PyTorch nn.Linear semantics (y = x @ W.T + b)."""
    h1 = jnp.maximum(x @ p["w1"].T + p["b1"].reshape(1, HIDDEN), 0.0)
    h2 = jnp.maximum(h1 @ p["w2"].T + p["b2"].reshape(1, HIDDEN), 0.0)
    return h2 @ p["w3"].T + p["b3"].reshape(1, 1)


if __name__ == "__main__":
    key = jax.random.PRNGKey(0)
    pkey, xkey1, xkey2 = jax.random.split(key, 3)
    params = init_params(pkey)

    # Small batch (consistent with the module's (B, 1) input), single tile + padding.
    B1 = 8
    x1 = jax.random.normal(xkey1, (B1, 1), jnp.float32)
    out1 = jax.block_until_ready(predictor_forward(x1, params))
    ref1 = reference_forward(x1, params)
    assert out1.shape == (B1, 1)
    assert jnp.allclose(out1, ref1, atol=1e-5, rtol=1e-5)

    # Small multi-tile batch (exercises the grid + padding path with tile_b=128).
    B2 = 300
    x2 = jax.random.normal(xkey2, (B2, 1), jnp.float32)
    out2 = jax.block_until_ready(predictor_forward(x2, params, tile_b=128))
    ref2 = reference_forward(x2, params)
    assert out2.shape == (B2, 1)
    assert jnp.allclose(out2, ref2, atol=1e-5, rtol=1e-5)

    print("KERNEL_OK")
</pallas_src>

<mosaic_0001>
module attributes {stable_mosaic.version = 11 : i64} {
  func.func @mlp_kernel(%arg0: i32, %arg1: memref<1x1024xf32, #tpu.memory_space<vmem>>, %arg2: memref<64x1xf32, #tpu.memory_space<vmem>>, %arg3: memref<64x1xf32, #tpu.memory_space<vmem>>, %arg4: memref<64x64xf32, #tpu.memory_space<vmem>>, %arg5: memref<64x1xf32, #tpu.memory_space<vmem>>, %arg6: memref<1x64xf32, #tpu.memory_space<vmem>>, %arg7: memref<1x1xf32, #tpu.memory_space<vmem>>, %arg8: memref<1x1024xf32, #tpu.memory_space<vmem>>) attributes {dimension_semantics = [#tpu.dimension_semantics<parallel>], iteration_bounds = array<i64: 1>, scalar_prefetch = 0 : i64, scratch_operands = 0 : i64, tpu.core_type = #tpu.core_type<tc>, window_params = [{transform_indices = @transform_0, window_bounds = array<i64: 1, 1024>}, {pipeline_mode = #tpu.pipeline_mode<synchronous>, transform_indices = @transform_1, window_bounds = array<i64: 64, 1>}, {pipeline_mode = #tpu.pipeline_mode<synchronous>, transform_indices = @transform_2, window_bounds = array<i64: 64, 1>}, {pipeline_mode = #tpu.pipeline_mode<synchronous>, transform_indices = @transform_3, window_bounds = array<i64: 64, 64>}, {pipeline_mode = #tpu.pipeline_mode<synchronous>, transform_indices = @transform_4, window_bounds = array<i64: 64, 1>}, {pipeline_mode = #tpu.pipeline_mode<synchronous>, transform_indices = @transform_5, window_bounds = array<i64: 1, 64>}, {pipeline_mode = #tpu.pipeline_mode<synchronous>, transform_indices = @transform_6, window_bounds = array<i64: 1, 1>}, {transform_indices = @transform_7, window_bounds = array<i64: 1, 1024>}]} {
    %c0 = arith.constant 0 : index
    %c0_0 = arith.constant 0 : index
    %0 = vector.load %arg1[%c0, %c0_0] : memref<1x1024xf32, #tpu.memory_space<vmem>>, vector<1x1024xf32>
    %c0_1 = arith.constant 0 : index
    %c0_2 = arith.constant 0 : index
    %1 = vector.load %arg2[%c0_1, %c0_2] : memref<64x1xf32, #tpu.memory_space<vmem>>, vector<64x1xf32>
    %c0_3 = arith.constant 0 : index
    %c0_4 = arith.constant 0 : index
    %2 = vector.load %arg3[%c0_3, %c0_4] : memref<64x1xf32, #tpu.memory_space<vmem>>, vector<64x1xf32>
    %c0_5 = arith.constant 0 : index
    %c0_6 = arith.constant 0 : index
    %3 = vector.load %arg4[%c0_5, %c0_6] : memref<64x64xf32, #tpu.memory_space<vmem>>, vector<64x64xf32>
    %c0_7 = arith.constant 0 : index
    %c0_8 = arith.constant 0 : index
    %4 = vector.load %arg5[%c0_7, %c0_8] : memref<64x1xf32, #tpu.memory_space<vmem>>, vector<64x1xf32>
    %c0_9 = arith.constant 0 : index
    %c0_10 = arith.constant 0 : index
    %5 = vector.load %arg6[%c0_9, %c0_10] : memref<1x64xf32, #tpu.memory_space<vmem>>, vector<1x64xf32>
    %c0_11 = arith.constant 0 : index
    %c0_12 = arith.constant 0 : index
    %6 = vector.load %arg7[%c0_11, %c0_12] : memref<1x1xf32, #tpu.memory_space<vmem>>, vector<1x1xf32>
    %7 = vector.broadcast %1 : vector<64x1xf32> to vector<64x1024xf32>
    %8 = vector.broadcast %0 : vector<1x1024xf32> to vector<64x1024xf32>
    %9 = arith.mulf %7, %8 : vector<64x1024xf32>
    %10 = vector.broadcast %2 : vector<64x1xf32> to vector<64x1024xf32>
    %11 = arith.addf %9, %10 : vector<64x1024xf32>
    %cst = arith.constant 0.000000e+00 : f32
    %12 = vector.broadcast %cst : f32 to vector<64x1024xf32>
    %13 = arith.maximumf %11, %12 : vector<64x1024xf32>
    %cst_13 = arith.constant dense<0.000000e+00> : vector<64x1024xf32>
    %14 = tpu.matmul %3, %13, %cst_13 {dimension_numbers = #tpu.dot_dimension_numbers<[1], [0], [0], [1], [0, 0, 1, 1], [], []>} : vector<64x64xf32>, vector<64x1024xf32>, vector<64x1024xf32> -> vector<64x1024xf32>
    %15 = vector.broadcast %4 : vector<64x1xf32> to vector<64x1024xf32>
    %16 = arith.addf %14, %15 : vector<64x1024xf32>
    %cst_14 = arith.constant 0.000000e+00 : f32
    %17 = vector.broadcast %cst_14 : f32 to vector<64x1024xf32>
    %18 = arith.maximumf %16, %17 : vector<64x1024xf32>
    %cst_15 = arith.constant dense<0.000000e+00> : vector<1x1024xf32>
    %19 = tpu.matmul %5, %18, %cst_15 {dimension_numbers = #tpu.dot_dimension_numbers<[1], [0], [0], [1], [0, 0, 1, 1], [], []>} : vector<1x64xf32>, vector<64x1024xf32>, vector<1x1024xf32> -> vector<1x1024xf32>
    %20 = vector.broadcast %6 : vector<1x1xf32> to vector<1x1024xf32>
    %21 = arith.addf %19, %20 : vector<1x1024xf32>
    %c0_16 = arith.constant 0 : index
    %c0_17 = arith.constant 0 : index
    %22 = vector.load %arg8[%c0_16, %c0_17] : memref<1x1024xf32, #tpu.memory_space<vmem>>, vector<1x1024xf32>
    tpu.vector_store %arg8[%c0_16, %c0_17], %21 {strides = array<i32>} : memref<1x1024xf32, #tpu.memory_space<vmem>>, vector<1x1024xf32>,
    return
  }
  func.func @transform_0(%arg0: i32) -> (i32, i32) {
    %c0_i32 = arith.constant 0 : i32
    %c0_i32_0 = arith.constant 0 : i32
    return %c0_i32, %arg0 : i32, i32
  }
  func.func @transform_1(%arg0: i32) -> (i32, i32) {
    %c0_i32 = arith.constant 0 : i32
    %c0_i32_0 = arith.constant 0 : i32
    %c0_i32_1 = arith.constant 0 : i32
    return %c0_i32, %c0_i32_0 : i32, i32
  }
  func.func @transform_2(%arg0: i32) -> (i32, i32) {
    %c0_i32 = arith.constant 0 : i32
    %c0_i32_0 = arith.constant 0 : i32
    %c0_i32_1 = arith.constant 0 : i32
    return %c0_i32, %c0_i32_0 : i32, i32
  }
  func.func @transform_3(%arg0: i32) -> (i32, i32) {
    %c0_i32 = arith.constant 0 : i32
    %c0_i32_0 = arith.constant 0 : i32
    %c0_i32_1 = arith.constant 0 : i32
    return %c0_i32, %c0_i32_0 : i32, i32
  }
  func.func @transform_4(%arg0: i32) -> (i32, i32) {
    %c0_i32 = arith.constant 0 : i32
    %c0_i32_0 = arith.constant 0 : i32
    %c0_i32_1 = arith.constant 0 : i32
    return %c0_i32, %c0_i32_0 : i32, i32
  }
  func.func @transform_5(%arg0: i32) -> (i32, i32) {
    %c0_i32 = arith.constant 0 : i32
    %c0_i32_0 = arith.constant 0 : i32
    %c0_i32_1 = arith.constant 0 : i32
    return %c0_i32, %c0_i32_0 : i32, i32
  }
  func.func @transform_6(%arg0: i32) -> (i32, i32) {
    %c0_i32 = arith.constant 0 : i32
    %c0_i32_0 = arith.constant 0 : i32
    %c0_i32_1 = arith.constant 0 : i32
    return %c0_i32, %c0_i32_0 : i32, i32
  }
  func.func @transform_7(%arg0: i32) -> (i32, i32) {
    %c0_i32 = arith.constant 0 : i32
    %c0_i32_0 = arith.constant 0 : i32
    return %c0_i32, %arg0 : i32, i32
  }
}

</mosaic_0001>

<bundles_post_ra>
// kernel: tpu_custom_call.1
= control target key start
LH: loop header
LB: loop body
LE: loop exit
PB: predicated region body
PF: predicated region fallthrough
CT: control target
= control target key end

     0   :  { %s2117_s0 = inlined_call_operand.vmem [shape: f32[1,1024], index: 0, kind: input, shape index: {}]   ;;  %s2118_s1 = inlined_call_operand.vmem [shape: f32[64,1], index: 1, kind: input, shape index: {}]   ;;  %s2119_s2 = inlined_call_operand.vmem [shape: f32[64,1], index: 2, kind: input, shape index: {}]   ;;  %s2120_s3 = inlined_call_operand.vmem [shape: f32[64,64], index: 3, kind: input, shape index: {}]   ;;  %s2121_s4 = inlined_call_operand.vmem [shape: f32[64,1], index: 4, kind: input, shape index: {}]   ;;  %s2122_s5 = inlined_call_operand.vmem [shape: f32[1,64], index: 5, kind: input, shape index: {}]   ;;  %s2123_s6 = inlined_call_operand.<no memory space> [shape: f32[1,1], index: 6, kind: input, shape index: {}]   ;;  %s2124_s7 = inlined_call_operand.hbm [shape: f32[1,1024], index: 7, kind: output, shape index: {}]  }
   0x1   :  { %v12_v0 = vstv %s2123_s6 }
   0x2   :  { %13 = vst [vmem:[#allocation2] sm:$0x1] %v12_v0 }
   0x3   :  { %v38_v1 = vld [vmem:[%s2119_s2] sm:$0xff]  ;;  %v1521_v3 = vmov 0   ;;  %v39_v4 = vld [vmem:[%s2119_s2 + $0x8] sm:$0xff]  ;;  %v33_v6 = vld [vmem:[%s2118_s1 + $0x18] sm:$0xff] }
   0x4   :  { %v30_v2 = vld [vmem:[%s2118_s1] sm:$0xff]  ;;  %1496 = vset.pattern.permute.xlu1 %v1521_v3  ;;  %1495 = vset.pattern.permute.xlu0 %v1521_v3  ;;  %v31_v5 = vld [vmem:[%s2118_s1 + $0x8] sm:$0xff]  ;;  %v32_v7 = vld [vmem:[%s2118_s1 + $0x10] sm:$0xff] }
   0x5   :  { %211 = vperm.xlu1 %1496, %v38_v1   ;;  %66 = vperm.xlu0 %1495, %v30_v2  }
   0x9   :  { %216 = vperm.xlu1 %1496, %v39_v4   ;;  %71 = vperm.xlu0 %1495, %v31_v5  }
   0xa   :  { %14 = vsyncpa [#allocation4], 0  ;;  %v41_v8 = vld [vmem:[%s2119_s2 + $0x18] sm:$0xff]  ;;  %v40_v9 = vld [vmem:[%s2119_s2 + $0x10] sm:$0xff]  ;;  %v1522_v24 = vmov 0.0   ;;  %v105_v28 = vlaneseq  ;;  %vm417_vm0 = vcmask 523264  }
   0xb   :  { %v35_v10 = vld [vmem:[%s2118_s1 + $0x28] sm:$0xff]  ;;  %v34_v11 = vld [vmem:[%s2118_s1 + $0x20] sm:$0xff]  ;;  %v37_v14 = vld [vmem:[%s2118_s1 + $0x38] sm:$0xff]  ;;  %506 = vmatprep.mubr.f32.mxu0 %v1522_v24  ;;  %619 = vmatprep.mubr.f32.mxu1 %v1522_v24 }
   0xc   :  { %v43_v12 = vld [vmem:[%s2119_s2 + $0x28] sm:$0xff]  ;;  %v42_v13 = vld [vmem:[%s2119_s2 + $0x20] sm:$0xff]  ;;  %v36_v15 = vld [vmem:[%s2118_s1 + $0x30] sm:$0xff]  ;;  %v1642_v29 = vshrl.u32 %v105_v28, 7 }
   0xd   :  { %81 = vperm.xlu1 %1496, %v33_v6   ;;  %76 = vperm.xlu0 %1495, %v32_v7   ;;  %v45_v16 = vld [vmem:[%s2119_s2 + $0x38] sm:$0xff]  ;;  %v44_v17 = vld [vmem:[%s2119_s2 + $0x30] sm:$0xff]  ;;  %v55_v18 = vld [vmem:[%s2121_s4 + $0x8] sm:$0xff] }
   0xe   :  { %v54_v19 = vld [vmem:[%s2121_s4] sm:$0xff]  ;;  %v57_v20 = vld [vmem:[%s2121_s4 + $0x18] sm:$0xff]  ;;  %v56_v21 = vld [vmem:[%s2121_s4 + $0x10] sm:$0xff]  ;;  %v111_v30 = vsub.s32 1, %v1642_v29  ;;  %v119_v31 = vsub.s32 3, %v1642_v29  ;;  %v107_v32 = vsub.s32 0, %v1642_v29 }
   0xf   :  { %v59_v22 = vld [vmem:[%s2121_s4 + $0x28] sm:$0xff]  ;;  %v58_v23 = vld [vmem:[%s2121_s4 + $0x20] sm:$0xff]  ;;  %v61_v25 = vld [vmem:[%s2121_s4 + $0x38] sm:$0xff]  ;;  %v115_v33 = vsub.s32 2, %v1642_v29  ;;  %v127_v35 = vsub.s32 5, %v1642_v29  ;;  %v135_v36 = vsub.s32 7, %v1642_v29 }
  0x10   :  { %v60_v26 = vld [vmem:[%s2121_s4 + $0x30] sm:$0xff]  ;;  %v63_v27 = vld [vmem:[#allocation2] sm:$0x1]  ;;  %v123_v37 = vsub.s32 4, %v1642_v29  ;;  %v131_v38 = vsub.s32 6, %v1642_v29 }
  0x11   :  { %226 = vperm.xlu1 %1496, %v41_v8   ;;  %221 = vperm.xlu0 %1495, %v40_v9   ;;  %v29_v34 = vld [vmem:[%s2117_s0] sm:$0xff] }
  0x12   :  { %v1655_v39 = vrot.slane %v29_v34, %v111_v30  ;;  %v1657_v40 = vrot.slane %v29_v34, %v119_v31  ;;  %v1661_v41 = vrot.slane %v29_v34, %v107_v32  ;;  %v1663_v42 = vrot.slane %v29_v34, %v115_v33 }
  0x13   :  { %v1665_v43 = vrot.slane %v29_v34, %v127_v35  ;;  %v1667_v44 = vrot.slane %v29_v34, %v135_v36  ;;  %v1669_v45 = vrot.slane %v29_v34, %v123_v37  ;;  %v1671_v46 = vrot.slane %v29_v34, %v131_v38 }
  0x15   :  { %91 = vperm.xlu1 %1496, %v35_v10   ;;  %86 = vperm.xlu0 %1495, %v34_v11  }
  0x19   :  { %236 = vperm.xlu1 %1496, %v43_v12   ;;  %231 = vperm.xlu0 %1495, %v42_v13  }
  0x1d   :  { %101 = vperm.xlu1 %1496, %v37_v14   ;;  %96 = vperm.xlu0 %1495, %v36_v15  }
  0x21   :  { %246 = vperm.xlu1 %1496, %v45_v16   ;;  %241 = vperm.xlu0 %1495, %v44_v17  }
  0x25   :  { %384 = vperm.xlu1 %1496, %v55_v18   ;;  %379 = vperm.xlu0 %1495, %v54_v19  }
  0x29   :  { %394 = vperm.xlu1 %1496, %v57_v20   ;;  %389 = vperm.xlu0 %1495, %v56_v21  }
  0x2d   :  { %404 = vperm.xlu1 %1496, %v59_v22   ;;  %399 = vperm.xlu0 %1495, %v58_v23  }
  0x31   :  { %414 = vperm.xlu1 %1496, %v61_v25   ;;  %409 = vperm.xlu0 %1495, %v60_v26  }
  0x35   :  { %960 = vperm.xlu0 %1495, %v63_v27  }
  0x84   :  { %v212_v47 = vpop.permute.xlu1 %211  ;;  %v67_v48 = vpop.permute.xlu0 %66 }
  0x85   :  { %v146_v49 = vmul.f32 %v1655_v39, %v67_v48  ;;  %v148_v50 = vmul.f32 %v1657_v40, %v67_v48  ;;  %v145_v51 = vmul.f32 %v1661_v41, %v67_v48  ;;  %v147_v52 = vmul.f32 %v1663_v42, %v67_v48 }
  0x86   :  { %v150_v53 = vmul.f32 %v1665_v43, %v67_v48  ;;  %v152_v54 = vmul.f32 %v1667_v44, %v67_v48  ;;  %v149_v55 = vmul.f32 %v1669_v45, %v67_v48  ;;  %v151_v56 = vmul.f32 %v1671_v46, %v67_v48 }
  0x87   :  { %v250_v57 = vadd.f32 %v212_v47, %v146_v49  ;;  %v252_v58 = vadd.f32 %v212_v47, %v148_v50  ;;  %v249_v59 = vadd.f32 %v212_v47, %v145_v51  ;;  %v251_v60 = vadd.f32 %v212_v47, %v147_v52 }
  0x88   :  { %v1681_v61 = vpop.permute.xlu1 %216  ;;  %v1683_v62 = vpop.permute.xlu0 %71  ;;  %v1685_v63 = vadd.f32 %v212_v47, %v150_v53  ;;  %v1687_v0 = vadd.f32 %v212_v47, %v152_v54  ;;  %v1693_v3 = vadd.f32 %v212_v47, %v149_v55  ;;  %v1695_v4 = vadd.f32 %v212_v47, %v151_v56 }
  0x89   :  { %v154_v1 = vmul.f32 %v1655_v39, %v1683_v62  ;;  %v156_v2 = vmul.f32 %v1657_v40, %v1683_v62  ;;  %v314_v5 = vmax.f32 %v250_v57, 0.0  ;;  %v316_v6 = vmax.f32 %v252_v58, 0.0 }
  0x8a   :  { %v153_v7 = vmul.f32 %v1661_v41, %v1683_v62  ;;  %v155_v8 = vmul.f32 %v1663_v42, %v1683_v62  ;;  %v313_v11 = vmax.f32 %v249_v59, 0.0  ;;  %v315_v12 = vmax.f32 %v251_v60, 0.0 }
  0x8b   :  { %v258_v9 = vadd.f32 %v1681_v61, %v154_v1  ;;  %v260_v10 = vadd.f32 %v1681_v61, %v156_v2  ;;  %v158_v17 = vmul.f32 %v1665_v43, %v1683_v62  ;;  %v1713_v18 = vmul.f32 %v1667_v44, %v1683_v62 }
  0x8c   :  { %v1703_v13 = vpop.permute.xlu1 %81  ;;  %v1705_v14 = vpop.permute.xlu0 %76  ;;  %v257_v15 = vadd.f32 %v1681_v61, %v153_v7  ;;  %v259_v16 = vadd.f32 %v1681_v61, %v155_v8 }
  0x8d   :  { %v322_v19 = vmax.f32 %v258_v9, 0.0  ;;  %v324_v20 = vmax.f32 %v260_v10, 0.0  ;;  %v162_v21 = vmul.f32 %v1655_v39, %v1705_v14  ;;  %v170_v22 = vmul.f32 %v1655_v39, %v1703_v13 }
  0x8e   :  { %v321_v23 = vmax.f32 %v257_v15, 0.0  ;;  %v323_v25 = vmax.f32 %v259_v16, 0.0  ;;  %v164_v26 = vmul.f32 %v1657_v40, %v1705_v14  ;;  %v172_v27 = vmul.f32 %v1657_v40, %v1703_v13 }
  0x8f   :  { %v1363_v28 = vpack.c.bf16 %v322_v19, %v314_v5  ;;  %v1379_v30 = vpack.c.bf16 %v324_v20, %v316_v6  ;;  %v161_v31 = vmul.f32 %v1661_v41, %v1705_v14  ;;  %v169_v33 = vmul.f32 %v1661_v41, %v1703_v13 }
  0x90   :  { %v1727_v34 = vpop.permute.xlu1 %226  ;;  %v1729_v35 = vpop.permute.xlu0 %221  ;;  %v1365_v36 = vpack.c.bf16 %v321_v23, %v313_v11  ;;  %v1381_v37 = vpack.c.bf16 %v323_v25, %v315_v12  ;;  %v163_v38 = vmul.f32 %v1663_v42, %v1705_v14  ;;  %v171_v47 = vmul.f32 %v1663_v42, %v1703_v13 }
  0x91   :  { %1364 = vmatprep.subr.bf16.mxu0 %v1363_v28  ;;  %1380 = vmatprep.subr.bf16.mxu1 %v1379_v30  ;;  %v266_v48 = vadd.f32 %v1729_v35, %v162_v21  ;;  %v274_v49 = vadd.f32 %v1727_v34, %v170_v22  ;;  %v268_v50 = vadd.f32 %v1729_v35, %v164_v26  ;;  %v318_v28 = vmax.f32 %v1685_v63, 0.0 }
  0x92   :  { %1366 = vmatpush1.bf16.msra.mxu0 %v1365_v36  ;;  %1382 = vmatpush1.bf16.msra.mxu1 %v1381_v37  ;;  %v276_v51 = vadd.f32 %v1727_v34, %v172_v27  ;;  %v265_v52 = vadd.f32 %v1729_v35, %v161_v31  ;;  %v273_v53 = vadd.f32 %v1727_v34, %v169_v33 }
  0x93   :  { %v330_v54 = vmax.f32 %v266_v48, 0.0  ;;  %v338_v55 = vmax.f32 %v274_v49, 0.0  ;;  %v332_v56 = vmax.f32 %v268_v50, 0.0  ;;  %v267_v57 = vadd.f32 %v1729_v35, %v163_v38 }
  0x94   :  { %v1742_v58 = vpop.permute.xlu1 %91  ;;  %v1744_v59 = vpop.permute.xlu0 %86  ;;  %v340_v60 = vmax.f32 %v276_v51, 0.0  ;;  %v329_v1 = vmax.f32 %v265_v52, 0.0  ;;  %v337_v2 = vmax.f32 %v273_v53, 0.0  ;;  %v275_v5 = vadd.f32 %v1727_v34, %v171_v47 }
  0x95   :  { %v1367_v6 = vpack.c.bf16 %v338_v55, %v330_v54  ;;  %v331_v7 = vmax.f32 %v267_v57, 0.0  ;;  %v178_v8 = vmul.f32 %v1655_v39, %v1744_v59  ;;  %v186_v9 = vmul.f32 %v1655_v39, %v1742_v58 }
  0x96   :  { %v1383_v10 = vpack.c.bf16 %v340_v60, %v332_v56  ;;  %v1369_v11 = vpack.c.bf16 %v337_v2, %v329_v1  ;;  %v339_v12 = vmax.f32 %v275_v5, 0.0  ;;  %v180_v15 = vmul.f32 %v1657_v40, %v1744_v59 }
  0x97   :  { %1368 = vmatprep.subr.bf16.mxu0 %v1367_v6  ;;  %v188_v16 = vmul.f32 %v1657_v40, %v1742_v58  ;;  %v177_v19 = vmul.f32 %v1661_v41, %v1744_v59  ;;  %v185_v20 = vmul.f32 %v1661_v41, %v1742_v58  ;;  %v179_v21 = vmul.f32 %v1663_v42, %v1744_v59 }
  0x98   :  { %1384 = vmatprep.subr.bf16.mxu1 %v1383_v10  ;;  %v1761_v22 = vpop.permute.xlu1 %236  ;;  %v1763_v23 = vpop.permute.xlu0 %231  ;;  %1370 = vmatpush1.bf16.msra.mxu0 %v1369_v11  ;;  %v1385_v25 = vpack.c.bf16 %v339_v12, %v331_v7  ;;  %v187_v26 = vmul.f32 %v1663_v42, %v1742_v58  ;;  %v1768_v27 = vadd.f32 %v1681_v61, %v158_v17 }
  0x99   :  { %v282_v30 = vadd.f32 %v1763_v23, %v178_v8  ;;  %v290_v31 = vadd.f32 %v1761_v22, %v186_v9  ;;  %v284_v33 = vadd.f32 %v1763_v23, %v180_v15  ;;  %v292_v36 = vadd.f32 %v1761_v22, %v188_v16 }
  0x9a   :  { %1386 = vmatpush1.bf16.msra.mxu1 %v1385_v25  ;;  %v281_v37 = vadd.f32 %v1763_v23, %v177_v19  ;;  %v289_v38 = vadd.f32 %v1761_v22, %v185_v20  ;;  %v283_v47 = vadd.f32 %v1763_v23, %v179_v21  ;;  %v291_v17 = vadd.f32 %v1761_v22, %v187_v26 }
  0x9b   :  { %v346_v48 = vmax.f32 %v282_v30, 0.0  ;;  %v354_v49 = vmax.f32 %v290_v31, 0.0  ;;  %v348_v63 = vmax.f32 %v284_v33, 0.0  ;;  %v356_v50 = vmax.f32 %v292_v36, 0.0 }
  0x9c   :  { %v1779_v51 = vpop.permute.xlu1 %101  ;;  %v1781_v52 = vpop.permute.xlu0 %96  ;;  %v345_v53 = vmax.f32 %v281_v37, 0.0  ;;  %v353_v54 = vmax.f32 %v289_v38, 0.0  ;;  %v347_v55 = vmax.f32 %v283_v47, 0.0  ;;  %v355_v56 = vmax.f32 %v291_v17, 0.0 }
  0x9d   :  { %v1371_v57 = vpack.c.bf16 %v354_v49, %v346_v48  ;;  %v1387_v60 = vpack.c.bf16 %v356_v50, %v348_v63  ;;  %v194_v1 = vmul.f32 %v1655_v39, %v1781_v52  ;;  %v202_v2 = vmul.f32 %v1655_v39, %v1779_v51 }
  0x9e   :  { %v1373_v5 = vpack.c.bf16 %v353_v54, %v345_v53  ;;  %v1389_v6 = vpack.c.bf16 %v355_v56, %v347_v55  ;;  %v196_v7 = vmul.f32 %v1657_v40, %v1781_v52  ;;  %v204_v8 = vmul.f32 %v1657_v40, %v1779_v51 }
  0x9f   :  { %1372 = vmatprep.subr.bf16.mxu0 %v1371_v57  ;;  %1388 = vmatprep.subr.bf16.mxu1 %v1387_v60  ;;  %v193_v9 = vmul.f32 %v1661_v41, %v1781_v52  ;;  %v201_v10 = vmul.f32 %v1661_v41, %v1779_v51  ;;  %v195_v11 = vmul.f32 %v1663_v42, %v1781_v52  ;;  %v320_v39 = vmax.f32 %v1687_v0, 0.0 }
  0xa0   :  { %v1798_v12 = vpop.permute.xlu1 %246  ;;  %v1800_v15 = vpop.permute.xlu0 %241  ;;  %1374 = vmatpush1.bf16.msra.mxu0 %v1373_v5  ;;  %1390 = vmatpush1.bf16.msra.mxu1 %v1389_v6  ;;  %v203_v40 = vmul.f32 %v1663_v42, %v1779_v51  ;;  %v326_v16 = vmax.f32 %v1768_v27, 0.0  ;;  %v264_v19 = vadd.f32 %v1681_v61, %v1713_v18  ;;  %v157_v41 = vmul.f32 %v1669_v45, %v1683_v62 }
  0xa1   :  { %v298_v0 = vadd.f32 %v1800_v15, %v194_v1  ;;  %v306_v20 = vadd.f32 %v1798_v12, %v202_v2  ;;  %v300_v21 = vadd.f32 %v1800_v15, %v196_v7  ;;  %v308_v25 = vadd.f32 %v1798_v12, %v204_v8 }
  0xa2   :  { %v297_v26 = vadd.f32 %v1800_v15, %v193_v9  ;;  %v305_v42 = vadd.f32 %v1798_v12, %v201_v10  ;;  %v299_v27 = vadd.f32 %v1800_v15, %v195_v11  ;;  %v307_v18 = vadd.f32 %v1798_v12, %v203_v40 }
  0xa3   :  { %v362_v30 = vmax.f32 %v298_v0, 0.0  ;;  %v370_v31 = vmax.f32 %v306_v20, 0.0  ;;  %v364_v33 = vmax.f32 %v300_v21, 0.0  ;;  %v372_v36 = vmax.f32 %v308_v25, 0.0  ;;  %v1853_v25 = vld [vmem:[%s2120_s3 + $0x8] sm:$0xff] }
  0xa4   :  { %v361_v37 = vmax.f32 %v297_v26, 0.0  ;;  %v369_v38 = vmax.f32 %v305_v42, 0.0  ;;  %v363_v47 = vmax.f32 %v299_v27, 0.0  ;;  %v371_v17 = vmax.f32 %v307_v18, 0.0 }
  0xa5   :  { %v1375_v48 = vpack.c.bf16 %v370_v31, %v362_v30  ;;  %v1391_v49 = vpack.c.bf16 %v372_v36, %v364_v33  ;;  %v1395_v63 = vpack.c.bf16 %v326_v16, %v318_v28  ;;  %v328_v50 = vmax.f32 %v264_v19, 0.0  ;;  %v1828_v28 = vld [vmem:[%s2120_s3] sm:$0xff] }
  0xa6   :  { %v1377_v53 = vpack.c.bf16 %v369_v38, %v361_v37  ;;  %v1393_v54 = vpack.c.bf16 %v371_v17, %v363_v47  ;;  %v261_v55 = vadd.f32 %v1681_v61, %v157_v41  ;;  %v159_v56 = vmul.f32 %v1671_v46, %v1683_v62 }
  0xa7   :  { %1376 = vmatprep.subr.bf16.mxu0 %v1375_v48  ;;  %1392 = vmatprep.subr.bf16.mxu1 %v1391_v49  ;;  %v1411_v57 = vpack.c.bf16 %v328_v50, %v320_v39  ;;  %v317_v60 = vmax.f32 %v1693_v3, 0.0  ;;  %v166_v1 = vmul.f32 %v1665_v43, %v1705_v14  ;;  %v174_v2 = vmul.f32 %v1665_v43, %v1703_v13 }
  0xa8   :  { %1378 = vmatpush1.bf16.msra.mxu0 %v1377_v53  ;;  %1394 = vmatpush1.bf16.msra.mxu1 %v1393_v54  ;;  %v325_v5 = vmax.f32 %v261_v55, 0.0  ;;  %v263_v62 = vadd.f32 %v1681_v61, %v159_v56  ;;  %v168_v6 = vmul.f32 %v1667_v44, %v1705_v14  ;;  %v176_v3 = vmul.f32 %v1667_v44, %v1703_v13  ;;  %v1886_v54 = vld [vmem:[%s2120_s3 + $0x10] sm:$0xff] }
  0xa9   :  { %1396 = vmatprep.subr.bf16.mxu0 %v1395_v63  ;;  %1412 = vmatprep.subr.bf16.mxu1 %v1411_v57  ;;  %v319_v7 = vmax.f32 %v1695_v4, 0.0  ;;  %v270_v8 = vadd.f32 %v1729_v35, %v166_v1  ;;  %v278_v9 = vadd.f32 %v1727_v34, %v174_v2  ;;  %v165_v10 = vmul.f32 %v1669_v45, %v1705_v14 }
  0xaa   :  { %v1397_v11 = vpack.c.bf16 %v325_v5, %v317_v60  ;;  %v327_v39 = vmax.f32 %v263_v62, 0.0  ;;  %v272_v61 = vadd.f32 %v1729_v35, %v168_v6  ;;  %v280_v40 = vadd.f32 %v1727_v34, %v176_v3 }
  0xab   :  { %1327 = vmatmul.mubr.msk.f32.vlgmr.msra.gmra.mrb[0].mxu0 %vm417_vm0, %v1828_v28  ;;  %1335 = vmatmul.mubr.msk.f32.vlgmr.msra.gmra.mrb[0].mxu1 %vm417_vm0, %v1828_v28  ;;  %v334_v4 = vmax.f32 %v270_v8, 0.0  ;;  %v342_v16 = vmax.f32 %v278_v9, 0.0  ;;  %v173_v19 = vmul.f32 %v1669_v45, %v1703_v13  ;;  %v269_v41 = vadd.f32 %v1729_v35, %v165_v10 }
  0xac   :  { %1398 = vmatpush1.bf16.msra.mxu0 %v1397_v11  ;;  %v1413_v0 = vpack.c.bf16 %v327_v39, %v319_v7  ;;  %v336_v20 = vmax.f32 %v272_v61, 0.0  ;;  %v344_v21 = vmax.f32 %v280_v40, 0.0  ;;  %512 = vmatprep.mubr.f32.mxu0 %v1522_v24  ;;  %v167_v26 = vmul.f32 %v1671_v46, %v1705_v14  ;;  %v1906_v11 = vld [vmem:[%s2120_s3 + $0x18] sm:$0xff] }
  0xad   :  { %v1399_v42 = vpack.c.bf16 %v342_v16, %v334_v4  ;;  %625 = vmatprep.mubr.f32.mxu1 %v1522_v24  ;;  %v277_v27 = vadd.f32 %v1727_v34, %v173_v19  ;;  %v333_v18 = vmax.f32 %v269_v41, 0.0  ;;  %v175_v30 = vmul.f32 %v1671_v46, %v1703_v13 }
  0xae   :  { %1414 = vmatpush1.bf16.msra.mxu1 %v1413_v0  ;;  %v1415_v31 = vpack.c.bf16 %v344_v21, %v336_v20  ;;  %v271_v33 = vadd.f32 %v1729_v35, %v167_v26  ;;  %v182_v36 = vmul.f32 %v1665_v43, %v1744_v59  ;;  %v190_v37 = vmul.f32 %v1665_v43, %v1742_v58 }
  0xaf   :  { %1400 = vmatprep.subr.bf16.mxu0 %v1399_v42  ;;  %1328 = vmatmul.mubr.msk.f32.gmra.mrb[2].mxu0 %vm417_vm0, %v1853_v25  ;;  %v341_v14 = vmax.f32 %v277_v27, 0.0  ;;  %v279_v38 = vadd.f32 %v1727_v34, %v175_v30  ;;  %v184_v13 = vmul.f32 %v1667_v44, %v1744_v59  ;;  %v192_v47 = vmul.f32 %v1667_v44, %v1742_v58  ;;  %v50_v42 = vld [vmem:[%s2120_s3 + $0x20] sm:$0xff] }
  0xb0   :  { %1416 = vmatprep.subr.bf16.mxu1 %v1415_v31  ;;  %1336 = vmatmul.mubr.msk.f32.gmra.mrb[2].mxu1 %vm417_vm0, %v1853_v25  ;;  %v335_v35 = vmax.f32 %v271_v33, 0.0  ;;  %v286_v17 = vadd.f32 %v1763_v23, %v182_v36  ;;  %v294_v48 = vadd.f32 %v1761_v22, %v190_v37  ;;  %v181_v49 = vmul.f32 %v1669_v45, %v1744_v59 }
  0xb1   :  { %v1401_v63 = vpack.c.bf16 %v341_v14, %v333_v18  ;;  %v343_v34 = vmax.f32 %v279_v38, 0.0  ;;  %v288_v50 = vadd.f32 %v1763_v23, %v184_v13  ;;  %v296_v53 = vadd.f32 %v1761_v22, %v192_v47  ;;  %518 = vmatprep.mubr.f32.mxu0 %v1522_v24  ;;  %631 = vmatprep.mubr.f32.mxu1 %v1522_v24 }
  0xb2   :  { %v350_v55 = vmax.f32 %v286_v17, 0.0  ;;  %v358_v56 = vmax.f32 %v294_v48, 0.0  ;;  %v189_v57 = vmul.f32 %v1669_v45, %v1742_v58  ;;  %v285_v60 = vadd.f32 %v1763_v23, %v181_v49  ;;  %v53_v48 = vld [vmem:[%s2120_s3 + $0x38] sm:$0xff] }
  0xb3   :  { %1402 = vmatpush1.bf16.msra.mxu0 %v1401_v63  ;;  %v1417_v1 = vpack.c.bf16 %v343_v34, %v335_v35  ;;  %v352_v2 = vmax.f32 %v288_v50, 0.0  ;;  %v360_v5 = vmax.f32 %v296_v53, 0.0  ;;  %v183_v62 = vmul.f32 %v1671_v46, %v1744_v59  ;;  %v2007_v34 = vpop.permute.xlu0 %379  ;;  %v2010_v53 = vpop.permute.xlu1 %384 }
  0xb4   :  { %v1403_v6 = vpack.c.bf16 %v358_v56, %v350_v55  ;;  %1329 = vmatmul.mubr.msk.f32.gmra.mrb[4].mxu0 %vm417_vm0, %v1886_v54  ;;  %1337 = vmatmul.mubr.msk.f32.gmra.mrb[4].mxu1 %vm417_vm0, %v1886_v54  ;;  %v293_v3 = vadd.f32 %v1761_v22, %v189_v57  ;;  %v349_v7 = vmax.f32 %v285_v60, 0.0  ;;  %v191_v8 = vmul.f32 %v1671_v46, %v1742_v58 }
  0xb5   :  { %1418 = vmatpush1.bf16.msra.mxu1 %v1417_v1  ;;  %v1419_v9 = vpack.c.bf16 %v360_v5, %v352_v2  ;;  %v287_v10 = vadd.f32 %v1763_v23, %v183_v62  ;;  %v198_v59 = vmul.f32 %v1665_v43, %v1781_v52  ;;  %v206_v40 = vmul.f32 %v1665_v43, %v1779_v51 }
  0xb6   :  { %1404 = vmatprep.subr.bf16.mxu0 %v1403_v6  ;;  %v357_v39 = vmax.f32 %v293_v3, 0.0  ;;  %v295_v61 = vadd.f32 %v1761_v22, %v191_v8  ;;  %v200_v58 = vmul.f32 %v1667_v44, %v1781_v52  ;;  %524 = vmatprep.mubr.f32.mxu0 %v1522_v24  ;;  %v208_v16 = vmul.f32 %v1667_v44, %v1779_v51 }
  0xb7   :  { %1420 = vmatprep.subr.bf16.mxu1 %v1419_v9  ;;  %v351_v23 = vmax.f32 %v287_v10, 0.0  ;;  %v302_v4 = vadd.f32 %v1800_v15, %v198_v59  ;;  %637 = vmatprep.mubr.f32.mxu1 %v1522_v24  ;;  %v197_v22 = vmul.f32 %v1669_v45, %v1781_v52  ;;  %v310_v43 = vadd.f32 %v1798_v12, %v206_v40 }
  0xb8   :  { %v1405_v19 = vpack.c.bf16 %v357_v39, %v349_v7  ;;  %v359_v41 = vmax.f32 %v295_v61, 0.0  ;;  %v304_v0 = vadd.f32 %v1800_v15, %v200_v58  ;;  %1330 = vmatmul.mubr.msk.f32.gmra.mrb[6].mxu0 %vm417_vm0, %v1906_v11  ;;  %1338 = vmatmul.mubr.msk.f32.gmra.mrb[6].mxu1 %vm417_vm0, %v1906_v11  ;;  %v312_v44 = vadd.f32 %v1798_v12, %v208_v16 }
  0xb9   :  { %v366_v20 = vmax.f32 %v302_v4, 0.0  ;;  %v205_v21 = vmul.f32 %v1669_v45, %v1779_v51  ;;  %v301_v26 = vadd.f32 %v1800_v15, %v197_v22  ;;  %530 = vmatprep.mubr.f32.mxu0 %v1522_v24  ;;  %643 = vmatprep.mubr.f32.mxu1 %v1522_v24  ;;  %v374_v18 = vmax.f32 %v310_v43, 0.0 }
  0xba   :  { %1406 = vmatpush1.bf16.msra.mxu0 %v1405_v19  ;;  %v1421_v27 = vpack.c.bf16 %v359_v41, %v351_v23  ;;  %v368_v30 = vmax.f32 %v304_v0, 0.0  ;;  %v199_v31 = vmul.f32 %v1671_v46, %v1781_v52  ;;  %v376_v33 = vmax.f32 %v312_v44, 0.0  ;;  %v51_v52 = vld [vmem:[%s2120_s3 + $0x28] sm:$0xff]  ;;  %v2019_v41 = vpop.permute.xlu0 %389  ;;  %v2021_v0 = vpop.permute.xlu1 %394 }
  0xbb   :  { %v309_v45 = vadd.f32 %v1798_v12, %v205_v21  ;;  %v365_v36 = vmax.f32 %v301_v26, 0.0  ;;  %v207_v37 = vmul.f32 %v1671_v46, %v1779_v51  ;;  %v1407_v14 = vpack.c.bf16 %v374_v18, %v366_v20 }
  0xbc   :  { %1422 = vmatpush1.bf16.msra.mxu1 %v1421_v27  ;;  %v303_v38 = vadd.f32 %v1800_v15, %v199_v31  ;;  %1331 = vmatmul.mubr.msk.f32.gmra.mrb[8].mxu0 %vm417_vm0, %v50_v42  ;;  %v1423_v13 = vpack.c.bf16 %v376_v33, %v368_v30 }
  0xbd   :  { %v373_v47 = vmax.f32 %v309_v45, 0.0  ;;  %v311_v35 = vadd.f32 %v1798_v12, %v207_v37  ;;  %1339 = vmatmul.mubr.msk.f32.gmra.mrb[8].mxu1 %vm417_vm0, %v50_v42  ;;  %536 = vmatprep.mubr.f32.mxu0 %v1522_v24  ;;  %v52_v12 = vld [vmem:[%s2120_s3 + $0x30] sm:$0xff] }
  0xbe   :  { %1408 = vmatprep.subr.bf16.mxu0 %v1407_v14  ;;  %v367_v46 = vmax.f32 %v303_v38, 0.0  ;;  %649 = vmatprep.mubr.f32.mxu1 %v1522_v24 }
  0xbf   :  { %1424 = vmatprep.subr.bf16.mxu1 %v1423_v13  ;;  %v1409_v51 = vpack.c.bf16 %v373_v47, %v365_v36  ;;  %v375_v15 = vmax.f32 %v311_v35, 0.0 }
  0xc0   :  { %1332 = vmatmul.mubr.msk.f32.gmra.mrb[10].mxu0 %vm417_vm0, %v51_v52 }
  0xc1   :  { %1410 = vmatpush1.bf16.msra.mxu0 %v1409_v51  ;;  %v1425_v17 = vpack.c.bf16 %v375_v15, %v367_v46  ;;  %1340 = vmatmul.mubr.msk.f32.gmra.mrb[10].mxu1 %vm417_vm0, %v51_v52 }
  0xc2   :  { %542 = vmatprep.mubr.f32.mxu0 %v1522_v24  ;;  %655 = vmatprep.mubr.f32.mxu1 %v1522_v24 }
  0xc3   :  { %1426 = vmatpush1.bf16.msra.mxu1 %v1425_v17 }
  0xc4   :  { %1333 = vmatmul.mubr.msk.f32.gmra.mrb[12].mxu0 %vm417_vm0, %v52_v12 }
  0xc5   :  { %1341 = vmatmul.mubr.msk.f32.gmra.mrb[12].mxu1 %vm417_vm0, %v52_v12  ;;  %548 = vmatprep.mubr.f32.mxu0 %v1522_v24 }
  0xc6   :  { %661 = vmatprep.mubr.f32.mxu1 %v1522_v24 }
  0xc8   :  { %1334 = vmatmul.mubr.msk.f32.gmra.mrb[14].mxu0 %vm417_vm0, %v53_v48 }
  0xc9   :  { %1342 = vmatmul.mubr.msk.f32.gmra.mrb[14].mxu1 %vm417_vm0, %v53_v48  ;;  %732 = vmatprep.mubr.f32.mxu0 %v1522_v24 }
  0xca   :  { %845 = vmatprep.mubr.f32.mxu1 %v1522_v24 }
  0xcc   :  { %1343 = vmatmul.mubr.msk.f32.vlgmr.msra.gmra.mrb[16].mxu0 %vm417_vm0, %v1828_v28 }
  0xcd   :  { %1351 = vmatmul.mubr.msk.f32.vlgmr.msra.gmra.mrb[16].mxu1 %vm417_vm0, %v1828_v28  ;;  %738 = vmatprep.mubr.f32.mxu0 %v1522_v24 }
  0xce   :  { %851 = vmatprep.mubr.f32.mxu1 %v1522_v24 }
  0xd0   :  { %1344 = vmatmul.mubr.msk.f32.gmra.mrb[18].mxu0 %vm417_vm0, %v1853_v25 }
  0xd1   :  { %1352 = vmatmul.mubr.msk.f32.gmra.mrb[18].mxu1 %vm417_vm0, %v1853_v25  ;;  %744 = vmatprep.mubr.f32.mxu0 %v1522_v24 }
  0xd2   :  { %857 = vmatprep.mubr.f32.mxu1 %v1522_v24 }
  0xd4   :  { %1345 = vmatmul.mubr.msk.f32.gmra.mrb[20].mxu0 %vm417_vm0, %v1886_v54 }
  0xd5   :  { %1353 = vmatmul.mubr.msk.f32.gmra.mrb[20].mxu1 %vm417_vm0, %v1886_v54  ;;  %750 = vmatprep.mubr.f32.mxu0 %v1522_v24 }
  0xd6   :  { %863 = vmatprep.mubr.f32.mxu1 %v1522_v24 }
  0xd8   :  { %1346 = vmatmul.mubr.msk.f32.gmra.mrb[22].mxu0 %vm417_vm0, %v1906_v11 }
  0xd9   :  { %1354 = vmatmul.mubr.msk.f32.gmra.mrb[22].mxu1 %vm417_vm0, %v1906_v11  ;;  %756 = vmatprep.mubr.f32.mxu0 %v1522_v24 }
  0xda   :  { %869 = vmatprep.mubr.f32.mxu1 %v1522_v24 }
  0xdc   :  { %1347 = vmatmul.mubr.msk.f32.gmra.mrb[24].mxu0 %vm417_vm0, %v50_v42 }
  0xdd   :  { %1355 = vmatmul.mubr.msk.f32.gmra.mrb[24].mxu1 %vm417_vm0, %v50_v42  ;;  %762 = vmatprep.mubr.f32.mxu0 %v1522_v24 }
  0xde   :  { %875 = vmatprep.mubr.f32.mxu1 %v1522_v24 }
  0xe0   :  { %1348 = vmatmul.mubr.msk.f32.gmra.mrb[26].mxu0 %vm417_vm0, %v51_v52 }
  0xe1   :  { %1356 = vmatmul.mubr.msk.f32.gmra.mrb[26].mxu1 %vm417_vm0, %v51_v52  ;;  %768 = vmatprep.mubr.f32.mxu0 %v1522_v24 }
  0xe2   :  { %881 = vmatprep.mubr.f32.mxu1 %v1522_v24 }
  0xe4   :  { %1349 = vmatmul.mubr.msk.f32.gmra.mrb[28].mxu0 %vm417_vm0, %v52_v12 }
  0xe5   :  { %1357 = vmatmul.mubr.msk.f32.gmra.mrb[28].mxu1 %vm417_vm0, %v52_v12  ;;  %774 = vmatprep.mubr.f32.mxu0 %v1522_v24 }
  0xe6   :  { %887 = vmatprep.mubr.f32.mxu1 %v1522_v24 }
  0xe8   :  { %1350 = vmatmul.mubr.msk.f32.gmra.mrb[30].mxu0 %vm417_vm0, %v53_v48 }
  0xe9   :  { %1358 = vmatmul.mubr.msk.f32.gmra.mrb[30].mxu1 %vm417_vm0, %v53_v48  ;;  %1034 = vmatprep.mubr.f32.mxu0 %v1522_v24 }
  0xea   :  { %1105 = vmatprep.mubr.f32.mxu1 %v1522_v24 }
 0x17e   :  { %v508_v28 = vpop.f32.mrb[0].mxu0  ;;  %v621_v25 = vpop.f32.mrb[0].mxu1 }
 0x17f   :  { %v510_v49 = vpop.f32.mrb[1].mxu0  ;;  %v623_v63 = vpop.f32.mrb[1].mxu1  ;;  %v509_v50 = vadd.f32 %v508_v28, %v2007_v34  ;;  %v622_v54 = vadd.f32 %v621_v25, %v2007_v34 }
 0x180   :  { %v511_v55 = vadd.f32 %v510_v49, %v2007_v34  ;;  %v624_v57 = vadd.f32 %v623_v63, %v2007_v34  ;;  %v2031_v28 = vpop.permute.xlu0 %399 }
 0x181   :  { %v894_v3 = vmax.f32 %v509_v50, 0.0  ;;  %v896_v9 = vmax.f32 %v622_v54, 0.0  ;;  %v2034_v54 = vpop.permute.xlu1 %404 }
 0x182   :  { %v514_v56 = vpop.f32.mrb[2].mxu0  ;;  %v895_v10 = vmax.f32 %v511_v55, 0.0  ;;  %v897_v39 = vmax.f32 %v624_v57, 0.0 }
 0x183   :  { %v515_v60 = vadd.f32 %v514_v56, %v2010_v53  ;;  %v627_v1 = vpop.f32.mrb[2].mxu1  ;;  %v516_v2 = vpop.f32.mrb[3].mxu0 }
 0x184   :  { %v628_v5 = vadd.f32 %v627_v1, %v2010_v53  ;;  %v517_v62 = vadd.f32 %v516_v2, %v2010_v53  ;;  %v629_v6 = vpop.f32.mrb[3].mxu1 }
 0x185   :  { %v902_v7 = vmax.f32 %v515_v60, 0.0  ;;  %v630_v8 = vadd.f32 %v629_v6, %v2010_v53 }
 0x186   :  { %v904_v59 = vmax.f32 %v628_v5, 0.0  ;;  %v903_v11 = vmax.f32 %v517_v62, 0.0 }
 0x187   :  { %v1429_v61 = vpack.c.bf16 %v902_v7, %v894_v3  ;;  %v905_v40 = vmax.f32 %v630_v8, 0.0  ;;  %v520_v58 = vpop.f32.mrb[4].mxu0  ;;  %v633_v23 = vpop.f32.mrb[4].mxu1 }
 0x188   :  { %v1445_v4 = vpack.c.bf16 %v904_v59, %v896_v9  ;;  %v1427_v16 = vpack.c.bf16 %v903_v11, %v895_v10  ;;  %v522_v22 = vpop.f32.mrb[5].mxu0  ;;  %v635_v19 = vpop.f32.mrb[5].mxu1  ;;  %v521_v20 = vadd.f32 %v520_v58, %v2019_v41  ;;  %v634_v44 = vadd.f32 %v633_v23, %v2019_v41 }
 0x189   :  { %v1443_v43 = vpack.c.bf16 %v905_v40, %v897_v39  ;;  %v523_v21 = vadd.f32 %v522_v22, %v2019_v41  ;;  %v636_v26 = vadd.f32 %v635_v19, %v2019_v41  ;;  %v2043_v22 = vpop.permute.xlu0 %409 }
 0x18a   :  { %1428 = vmatprep.subr.bf16.mxu0 %v1427_v16  ;;  %v910_v37 = vmax.f32 %v521_v20, 0.0  ;;  %v912_v14 = vmax.f32 %v634_v44, 0.0 }
 0x18b   :  { %v526_v42 = vpop.f32.mrb[6].mxu0  ;;  %v639_v27 = vpop.f32.mrb[6].mxu1  ;;  %1444 = vmatprep.subr.bf16.mxu1 %v1443_v43  ;;  %1430 = vmatpush1.bf16.msra.mxu0 %v1429_v61  ;;  %v911_v47 = vmax.f32 %v523_v21, 0.0  ;;  %v913_v35 = vmax.f32 %v636_v26, 0.0 }
 0x18c   :  { %v527_v18 = vadd.f32 %v526_v42, %v2021_v0  ;;  %v640_v30 = vadd.f32 %v639_v27, %v2021_v0  ;;  %v528_v31 = vpop.f32.mrb[7].mxu0  ;;  %v641_v33 = vpop.f32.mrb[7].mxu1  ;;  %1446 = vmatpush1.bf16.msra.mxu1 %v1445_v4 }
 0x18d   :  { %v529_v45 = vadd.f32 %v528_v31, %v2021_v0  ;;  %v642_v36 = vadd.f32 %v641_v33, %v2021_v0  ;;  %v2046_v26 = vpop.permute.xlu1 %414 }
 0x18e   :  { %v918_v38 = vmax.f32 %v527_v18, 0.0  ;;  %v920_v13 = vmax.f32 %v640_v30, 0.0 }
 0x18f   :  { %v919_v52 = vmax.f32 %v529_v45, 0.0  ;;  %v921_v46 = vmax.f32 %v642_v36, 0.0  ;;  %v532_v51 = vpop.f32.mrb[8].mxu0 }
 0x190   :  { %v1433_v15 = vpack.c.bf16 %v918_v38, %v910_v37  ;;  %v1449_v17 = vpack.c.bf16 %v920_v13, %v912_v14  ;;  %v645_v12 = vpop.f32.mrb[8].mxu1  ;;  %v534_v48 = vpop.f32.mrb[9].mxu0  ;;  %v533_v50 = vadd.f32 %v532_v51, %v2031_v28 }
 0x191   :  { %v1431_v25 = vpack.c.bf16 %v919_v52, %v911_v47  ;;  %v1447_v49 = vpack.c.bf16 %v921_v46, %v913_v35  ;;  %v647_v63 = vpop.f32.mrb[9].mxu1  ;;  %v646_v55 = vadd.f32 %v645_v12, %v2031_v28  ;;  %v535_v56 = vadd.f32 %v534_v48, %v2031_v28 }
 0x192   :  { %v648_v60 = vadd.f32 %v647_v63, %v2031_v28  ;;  %v926_v7 = vmax.f32 %v533_v50, 0.0 }
 0x193   :  { %v538_v57 = vpop.f32.mrb[10].mxu0  ;;  %1432 = vmatprep.subr.bf16.mxu0 %v1431_v25  ;;  %1448 = vmatprep.subr.bf16.mxu1 %v1447_v49  ;;  %v928_v10 = vmax.f32 %v646_v55, 0.0  ;;  %v927_v59 = vmax.f32 %v535_v56, 0.0 }
 0x194   :  { %v539_v1 = vadd.f32 %v538_v57, %v2034_v54  ;;  %v651_v2 = vpop.f32.mrb[10].mxu1  ;;  %v540_v5 = vpop.f32.mrb[11].mxu0  ;;  %1434 = vmatpush1.bf16.msra.mxu0 %v1433_v15  ;;  %1450 = vmatpush1.bf16.msra.mxu1 %v1449_v17  ;;  %v929_v40 = vmax.f32 %v648_v60, 0.0 }
 0x195   :  { %v652_v62 = vadd.f32 %v651_v2, %v2034_v54  ;;  %v541_v6 = vadd.f32 %v540_v5, %v2034_v54  ;;  %v653_v3 = vpop.f32.mrb[11].mxu1 }
 0x196   :  { %v934_v8 = vmax.f32 %v539_v1, 0.0  ;;  %v654_v9 = vadd.f32 %v653_v3, %v2034_v54 }
 0x197   :  { %v936_v11 = vmax.f32 %v652_v62, 0.0  ;;  %v935_v39 = vmax.f32 %v541_v6, 0.0  ;;  %v544_v61 = vpop.f32.mrb[12].mxu0 }
 0x198   :  { %v1437_v58 = vpack.c.bf16 %v934_v8, %v926_v7  ;;  %v937_v23 = vmax.f32 %v654_v9, 0.0  ;;  %v657_v4 = vpop.f32.mrb[12].mxu1  ;;  %v546_v16 = vpop.f32.mrb[13].mxu0  ;;  %v545_v21 = vadd.f32 %v544_v61, %v2043_v22  ;;  %v2063_v7 = vld [vmem:[%s2122_s5] sm:$0x1]  ;;  %s1524_s5 = smov [#allocation3]  }
 0x199   :  { %v1453_v19 = vpack.c.bf16 %v936_v11, %v928_v10  ;;  %v1435_v43 = vpack.c.bf16 %v935_v39, %v927_v59  ;;  %v659_v20 = vpop.f32.mrb[13].mxu1  ;;  %v658_v42 = vadd.f32 %v657_v4, %v2043_v22  ;;  %v547_v27 = vadd.f32 %v546_v16, %v2043_v22  ;;  %s1319_s16 = sshll.u32 %s1524_s5, 4  ;;  %s1320_s16 = int_to_ptr.vmem [resolvable:$true] %s1319_s16 }
 0x19a   :  { %v1451_v44 = vpack.c.bf16 %v937_v23, %v929_v40  ;;  %v660_v30 = vadd.f32 %v659_v20, %v2043_v22  ;;  %v942_v38 = vmax.f32 %v545_v21, 0.0  ;;  %s1497_s2 = scalar_lea.vmem %s1320_s16, 128  ;;  %p1502_p1 = scmp.lt.s32.totalorder %s1320_s16, %s1320_s16 }
 0x19b   :  { %v550_v18 = vpop.f32.mrb[14].mxu0  ;;  %1436 = vmatprep.subr.bf16.mxu0 %v1435_v43  ;;  %v944_v35 = vmax.f32 %v658_v42, 0.0  ;;  %v943_v52 = vmax.f32 %v547_v27, 0.0  ;;  %p1498_p0 = scmp.ne.s32.totalorder %s1320_s16, %s1497_s2  ;;  %p1503_p2 = scmp.lt.s32.totalorder %s1497_s2, %s1497_s2 }
 0x19c   :  { %v551_v31 = vadd.f32 %v550_v18, %v2046_v26  ;;  %v663_v33 = vpop.f32.mrb[14].mxu1  ;;  %1452 = vmatprep.subr.bf16.mxu1 %v1451_v44  ;;  %v552_v45 = vpop.f32.mrb[15].mxu0  ;;  %1438 = vmatpush1.bf16.msra.mxu0 %v1437_v58  ;;  %v945_v17 = vmax.f32 %v660_v30, 0.0 }
 0x19d   :  { %v664_v36 = vadd.f32 %v663_v33, %v2046_v26  ;;  %v553_v37 = vadd.f32 %v552_v45, %v2046_v26  ;;  %v665_v14 = vpop.f32.mrb[15].mxu1  ;;  %1454 = vmatpush1.bf16.msra.mxu1 %v1453_v19  ;;  %p1504_p3 = por %p1503_p2, %p1502_p1 }
 0x19e   :  { %v950_v13 = vmax.f32 %v551_v31, 0.0  ;;  %v666_v47 = vadd.f32 %v665_v14, %v2046_v26 }
 0x19f   :  { %v952_v46 = vmax.f32 %v664_v36, 0.0  ;;  %v951_v51 = vmax.f32 %v553_v37, 0.0  ;;  %v734_v15 = vpop.f32.mrb[16].mxu0  ;;  %p1505_p4 = pnand %p1504_p3, %p1498_p0 }
 0x1a0   :  { %v1441_v12 = vpack.c.bf16 %v950_v13, %v942_v38  ;;  %v953_v48 = vmax.f32 %v666_v47, 0.0  ;;  %v847_v25 = vpop.f32.mrb[16].mxu1  ;;  %v736_v49 = vpop.f32.mrb[17].mxu0  ;;  %v735_v57 = vadd.f32 %v734_v15, %v2007_v34 }
 0x1a1   :  { %v1457_v63 = vpack.c.bf16 %v952_v46, %v944_v35  ;;  %v1439_v50 = vpack.c.bf16 %v951_v51, %v943_v52  ;;  %v849_v55 = vpop.f32.mrb[17].mxu1  ;;  %v848_v60 = vadd.f32 %v847_v25, %v2007_v34  ;;  %v737_v1 = vadd.f32 %v736_v49, %v2007_v34 }
 0x1a2   :  { %v1455_v56 = vpack.c.bf16 %v953_v48, %v945_v17  ;;  %v850_v5 = vadd.f32 %v849_v55, %v2007_v34  ;;  %v898_v59 = vmax.f32 %v735_v57, 0.0 }
 0x1a3   :  { %v740_v2 = vpop.f32.mrb[18].mxu0  ;;  %1440 = vmatprep.subr.bf16.mxu0 %v1439_v50  ;;  %v900_v39 = vmax.f32 %v848_v60, 0.0  ;;  %v899_v61 = vmax.f32 %v737_v1, 0.0 }
 0x1a4   :  { %v741_v62 = vadd.f32 %v740_v2, %v2010_v53  ;;  %v853_v6 = vpop.f32.mrb[18].mxu1  ;;  %1456 = vmatprep.subr.bf16.mxu1 %v1455_v56  ;;  %v742_v3 = vpop.f32.mrb[19].mxu0  ;;  %1442 = vmatpush1.bf16.msra.mxu0 %v1441_v12  ;;  %v901_v4 = vmax.f32 %v850_v5, 0.0 }
 0x1a5   :  { %v854_v8 = vadd.f32 %v853_v6, %v2010_v53  ;;  %v743_v9 = vadd.f32 %v742_v3, %v2010_v53  ;;  %v855_v10 = vpop.f32.mrb[19].mxu1  ;;  %1458 = vmatpush1.bf16.msra.mxu1 %v1457_v63 }
 0x1a6   :  { %v906_v11 = vmax.f32 %v741_v62, 0.0  ;;  %v856_v34 = vadd.f32 %v855_v10, %v2010_v53 }
 0x1a7   :  { %v908_v40 = vmax.f32 %v854_v8, 0.0  ;;  %v907_v58 = vmax.f32 %v743_v9, 0.0  ;;  %v746_v23 = vpop.f32.mrb[20].mxu0  ;;  %1359 = vmatmul.mubr.msk.f32.vlgmr.msra.gmra.mrb[32].mxu0 %vm417_vm0, %v2063_v7 }
 0x1a8   :  { %v1461_v16 = vpack.c.bf16 %v906_v11, %v898_v59  ;;  %v909_v19 = vmax.f32 %v856_v34, 0.0  ;;  %v859_v43 = vpop.f32.mrb[20].mxu1  ;;  %1360 = vmatmul.mubr.msk.f32.vlgmr.msra.gmra.mrb[32].mxu1 %vm417_vm0, %v2063_v7  ;;  %v748_v20 = vpop.f32.mrb[21].mxu0  ;;  %1176 = vmatprep.mubr.f32.mxu0 %v1522_v24  ;;  %v747_v27 = vadd.f32 %v746_v23, %v2019_v41 }
 0x1a9   :  { %v1477_v44 = vpack.c.bf16 %v908_v40, %v900_v39  ;;  %v1459_v53 = vpack.c.bf16 %v907_v58, %v899_v61  ;;  %v861_v21 = vpop.f32.mrb[21].mxu1  ;;  %1247 = vmatprep.mubr.f32.mxu1 %v1522_v24  ;;  %v860_v18 = vadd.f32 %v859_v43, %v2019_v41  ;;  %v749_v30 = vadd.f32 %v748_v20, %v2019_v41 }
 0x1aa   :  { %v1475_v42 = vpack.c.bf16 %v909_v19, %v901_v4  ;;  %v862_v33 = vadd.f32 %v861_v21, %v2019_v41  ;;  %v914_v13 = vmax.f32 %v747_v27, 0.0 }
 0x1ab   :  { %v752_v31 = vpop.f32.mrb[22].mxu0  ;;  %1460 = vmatprep.subr.bf16.mxu0 %v1459_v53  ;;  %v916_v52 = vmax.f32 %v860_v18, 0.0  ;;  %v915_v46 = vmax.f32 %v749_v30, 0.0 }
 0x1ac   :  { %v753_v45 = vadd.f32 %v752_v31, %v2021_v0  ;;  %v865_v36 = vpop.f32.mrb[22].mxu1  ;;  %1476 = vmatprep.subr.bf16.mxu1 %v1475_v42  ;;  %v754_v37 = vpop.f32.mrb[23].mxu0  ;;  %1462 = vmatpush1.bf16.msra.mxu0 %v1461_v16  ;;  %v917_v17 = vmax.f32 %v862_v33, 0.0 }
 0x1ad   :  { %v866_v14 = vadd.f32 %v865_v36, %v2021_v0  ;;  %v755_v24 = vadd.f32 %v754_v37, %v2021_v0  ;;  %v867_v38 = vpop.f32.mrb[23].mxu1  ;;  %1478 = vmatpush1.bf16.msra.mxu1 %v1477_v44 }
 0x1ae   :  { %v922_v47 = vmax.f32 %v753_v45, 0.0  ;;  %v868_v35 = vadd.f32 %v867_v38, %v2021_v0 }
 0x1af   :  { %v924_v51 = vmax.f32 %v866_v14, 0.0  ;;  %v923_v41 = vmax.f32 %v755_v24, 0.0  ;;  %v758_v15 = vpop.f32.mrb[24].mxu0 }
 0x1b0   :  { %v1465_v12 = vpack.c.bf16 %v922_v47, %v914_v13  ;;  %v925_v48 = vmax.f32 %v868_v35, 0.0  ;;  %v871_v25 = vpop.f32.mrb[24].mxu1  ;;  %v760_v49 = vpop.f32.mrb[25].mxu0  ;;  %v759_v57 = vadd.f32 %v758_v15, %v2031_v28 }
 0x1b1   :  { %v1481_v63 = vpack.c.bf16 %v924_v51, %v916_v52  ;;  %v1463_v50 = vpack.c.bf16 %v923_v41, %v915_v46  ;;  %v873_v55 = vpop.f32.mrb[25].mxu1  ;;  %v872_v60 = vadd.f32 %v871_v25, %v2031_v28  ;;  %v761_v0 = vadd.f32 %v760_v49, %v2031_v28 }
 0x1b2   :  { %v1479_v56 = vpack.c.bf16 %v925_v48, %v917_v17  ;;  %v874_v2 = vadd.f32 %v873_v55, %v2031_v28  ;;  %v930_v10 = vmax.f32 %v759_v57, 0.0  ;;  %v961_v48 = vpop.permute.xlu0 %960 }
 0x1b3   :  { %v764_v1 = vpop.f32.mrb[26].mxu0  ;;  %1464 = vmatprep.subr.bf16.mxu0 %v1463_v50  ;;  %v932_v34 = vmax.f32 %v872_v60, 0.0  ;;  %v931_v39 = vmax.f32 %v761_v0, 0.0  ;;  %v966_v49 = vrot.slane %v961_v48, %v107_v32 }
 0x1b4   :  { %v765_v5 = vadd.f32 %v764_v1, %v2034_v54  ;;  %v877_v62 = vpop.f32.mrb[26].mxu1  ;;  %1480 = vmatprep.subr.bf16.mxu1 %v1479_v56  ;;  %v766_v6 = vpop.f32.mrb[27].mxu0  ;;  %1466 = vmatpush1.bf16.msra.mxu0 %v1465_v12  ;;  %v933_v58 = vmax.f32 %v874_v2, 0.0 }
 0x1b5   :  { %v878_v3 = vadd.f32 %v877_v62, %v2034_v54  ;;  %v767_v8 = vadd.f32 %v766_v6, %v2034_v54  ;;  %v879_v9 = vpop.f32.mrb[27].mxu1  ;;  %1482 = vmatpush1.bf16.msra.mxu1 %v1481_v63 }
 0x1b6   :  { %v938_v59 = vmax.f32 %v765_v5, 0.0  ;;  %v880_v11 = vadd.f32 %v879_v9, %v2034_v54 }
 0x1b7   :  { %v940_v61 = vmax.f32 %v878_v3, 0.0  ;;  %v939_v28 = vmax.f32 %v767_v8, 0.0  ;;  %v770_v40 = vpop.f32.mrb[28].mxu0 }
 0x1b8   :  { %v1469_v23 = vpack.c.bf16 %v938_v59, %v930_v10  ;;  %v941_v4 = vmax.f32 %v880_v11, 0.0  ;;  %v883_v16 = vpop.f32.mrb[28].mxu1  ;;  %v772_v19 = vpop.f32.mrb[29].mxu0  ;;  %v771_v21 = vadd.f32 %v770_v40, %v2043_v22 }
 0x1b9   :  { %v1485_v43 = vpack.c.bf16 %v940_v61, %v932_v34  ;;  %v1467_v20 = vpack.c.bf16 %v939_v28, %v931_v39  ;;  %v885_v44 = vpop.f32.mrb[29].mxu1  ;;  %v884_v42 = vadd.f32 %v883_v16, %v2043_v22  ;;  %v773_v54 = vadd.f32 %v772_v19, %v2043_v22 }
 0x1ba   :  { %v1483_v53 = vpack.c.bf16 %v941_v4, %v933_v58  ;;  %v886_v18 = vadd.f32 %v885_v44, %v2043_v22  ;;  %v946_v14 = vmax.f32 %v771_v21, 0.0 }
 0x1bb   :  { %v776_v27 = vpop.f32.mrb[30].mxu0  ;;  %1468 = vmatprep.subr.bf16.mxu0 %v1467_v20  ;;  %v948_v13 = vmax.f32 %v884_v42, 0.0  ;;  %v947_v47 = vmax.f32 %v773_v54, 0.0 }
 0x1bc   :  { %v777_v30 = vadd.f32 %v776_v27, %v2046_v26  ;;  %v889_v31 = vpop.f32.mrb[30].mxu1  ;;  %1484 = vmatprep.subr.bf16.mxu1 %v1483_v53  ;;  %v778_v33 = vpop.f32.mrb[31].mxu0  ;;  %1470 = vmatpush1.bf16.msra.mxu0 %v1469_v23  ;;  %v949_v52 = vmax.f32 %v886_v18, 0.0 }
 0x1bd   :  { %v890_v45 = vadd.f32 %v889_v31, %v2046_v26  ;;  %v779_v36 = vadd.f32 %v778_v33, %v2046_v26  ;;  %v891_v37 = vpop.f32.mrb[31].mxu1  ;;  %1486 = vmatpush1.bf16.msra.mxu1 %v1485_v43 }
 0x1be   :  { %v954_v24 = vmax.f32 %v777_v30, 0.0  ;;  %v892_v38 = vadd.f32 %v891_v37, %v2046_v26  ;;  %v1523_v26 = vmov 1966171168  }
 0x1bf   :  { %v956_v35 = vmax.f32 %v890_v45, 0.0  ;;  %v955_v22 = vmax.f32 %v779_v36, 0.0  ;;  %v1267_v12 = vunpack.c.l.s4 %v1523_v26 }
 0x1c0   :  { %v1473_v46 = vpack.c.bf16 %v954_v24, %v946_v14  ;;  %v957_v51 = vmax.f32 %v892_v38, 0.0 }
 0x1c1   :  { %v1489_v41 = vpack.c.bf16 %v956_v35, %v948_v13  ;;  %v1471_v15 = vpack.c.bf16 %v955_v22, %v947_v47  ;;  %v1268_v25 = vunpack.c.0.s8 %v1267_v12 }
 0x1c2   :  { %v1487_v17 = vpack.c.bf16 %v957_v51, %v949_v52 }
 0x1c3   :  { %1472 = vmatprep.subr.bf16.mxu0 %v1471_v15  ;;  %v1271_v0 = vsub.s32 %v1268_v25, %v1642_v29 }
 0x1c4   :  { %1488 = vmatprep.subr.bf16.mxu1 %v1487_v17  ;;  %1474 = vmatpush1.bf16.msra.mxu0 %v1473_v46 }
 0x1c5   :  { %1490 = vmatpush1.bf16.msra.mxu1 %v1489_v41 }
 0x1c7   :  { %1361 = vmatmul.mubr.msk.f32.vlgmr.msra.gmra.mrb[34].mxu0 %vm417_vm0, %v2063_v7 }
 0x1c8   :  { %1362 = vmatmul.mubr.msk.f32.vlgmr.msra.gmra.mrb[34].mxu1 %vm417_vm0, %v2063_v7 }
 0x27a   :  { %v1036_v63 = vpop.f32.mrb[32].mxu0 }
 0x27b   :  { %v1037_v50 = vadd.f32 %v1036_v63, %v966_v49  ;;  %v1107_v55 = vpop.f32.mrb[32].mxu1  ;;  %v1038_v56 = vpop.f32.mrb[33].mxu0 }
 0x27c   :  { %v1108_v57 = vadd.f32 %v1107_v55, %v966_v49  ;;  %v1039_v60 = vadd.f32 %v1038_v56, %v966_v49  ;;  %v1109_v1 = vpop.f32.mrb[33].mxu1 }
 0x27d   :  { %v1110_v2 = vadd.f32 %v1109_v1, %v966_v49 }
 0x27e   :  { %v1262_v5 = vcombine.low %v1037_v50, %v1039_v60 }
 0x27f   :  { %v1263_v62 = vcombine.low %v1108_v57, %v1110_v2 }
 0x280   :  { %v1272_v7 = vrot.slane %v1262_v5, %v1271_v0 }
 0x281   :  { %v1279_v6 = vrot.slane %v1263_v62, %v1271_v0 }
 0x283   :  { %v1294_v3 = vcombine.low %v1272_v7, %v1279_v6 }
 0x285   :  { %v1302_v23 = vrot.slane %v1294_v3, %v1271_v0 }
 0x29a   :  { %v1178_v8 = vpop.f32.mrb[34].mxu0 }
 0x29b   :  { %v1179_v9 = vadd.f32 %v1178_v8, %v966_v49  ;;  %v1249_v10 = vpop.f32.mrb[34].mxu1  ;;  %v1180_v59 = vpop.f32.mrb[35].mxu0 }
 0x29c   :  { %v1250_v32 = vadd.f32 %v1249_v10, %v966_v49  ;;  %v1181_v11 = vadd.f32 %v1180_v59, %v966_v49  ;;  %v1251_v34 = vpop.f32.mrb[35].mxu1 }
 0x29d   :  { %v1252_v39 = vadd.f32 %v1251_v34, %v966_v49 }
 0x29e   :  { %v1264_v61 = vcombine.low %v1179_v9, %v1181_v11 }
 0x29f   :  { %v1265_v28 = vcombine.low %v1250_v32, %v1252_v39 }
 0x2a0   :  { %v1286_v40 = vrot.slane %v1264_v61, %v1271_v0 }
 0x2a1   :  { %v1293_v58 = vrot.slane %v1265_v28, %v1271_v0 }
 0x2a3   :  { %v1295_v29 = vcombine.low %v1286_v40, %v1293_v58 }
 0x2a5   :  { %v1309_v4 = vrot.slane %v1295_v29, %v1271_v0 }
 0x2a7   :  { %v1310_v16 = vcombine.low %v1302_v23, %v1309_v4 }
 0x2a9   :  { %1312 = vst [vmem:[#allocation3] sm:$0xff] %v1310_v16 }
 0x2aa   :  { %1508 = shalt.err (!%p1505_p4)
}
 0x2ab   :  { %s1509_s19 = scalar_lea.hbm %s2124_s7, 128 }
 0x2ac   :  { %p1510_p5 = scmp.ne.s32.totalorder %s2124_s7, %s1509_s19  ;;  %p1513_p6 = scmp.lt.u32.totalorder %s1509_s19, %s2124_s7 }
 0x2ae   :  { %p1515_p7 = pnand %p1513_p6, %p1510_p5 }
 0x2b0   :  { %1518 = shalt.err (!%p1515_p7)
}
 0x2b1   :  { %1322 = dma.vmem_to_hbm [thread:$0]  %s1320_s16, 128, %s2124_s7, [#allocation4]  }
 0x2b2   :  { %1519 = dma.done.wait [#allocation4], 128  }
 0x2b3   :  { %1520 = vsyncadd [#allocation4], 4294967168 }
 0x2b4   :  { %1326 = vsyncpa [#allocation4], 1 }

</bundles_post_ra>
